<compile_context>
chip_gen: v7x
topology: tpu7x:2x2x1
jax: 0.10.0
libtpu: 0.0.40
codegen_flags: <defaults>
</compile_context>

<pallas_src>
import functools

import jax
import jax.numpy as jnp
from jax.experimental import pallas as pl
from jax.experimental.pallas import tpu as pltpu

NEG_SLOPE = 0.01   # nn.LeakyReLU default
BN_EPS = 1e-5      # nn.BatchNorm1d default


def _im2col_lanes(x, K, pad):
    """x: (C, L) with L on lanes.  Returns (K*C, L) where
    out[k*C + c, l] = x[c, l + k - pad], zero outside [0, L)  ("same" zero padding)."""
    C, L = x.shape
    lane = jax.lax.broadcasted_iota(jnp.int32, (C, L), 1)
    cols = []
    for k in range(K):                      # static unroll over taps
        s = pad - k                         # rolled[:, l] = x[:, l - s] = x[:, l + k - pad]
        if s == 0:
            cols.append(x)
        else:
            shifted = pltpu.roll(x, s % L, axis=1)          # lane rotate (XLU)
            valid = (lane >= s) & (lane < L + s)            # mask wrapped halo rows
            cols.append(jnp.where(valid, shifted, jnp.zeros_like(shifted)))
    return jnp.concatenate(cols, axis=0)    # sublane concat, C-aligned pieces


def basic_block_kernel(x_ref, w1_ref, s1_ref, b1_ref, w2_ref, s2_ref, b2_ref,
                       o_ref, *, K):
    """One batch chunk per grid step (NCL layout: C on sublanes, L on lanes).

    x_ref  : (Nb, Cin, L)       input chunk (also used as the identity shortcut)
    w1_ref : (Cmid, K*Cin)      conv1 weights, im2col-flattened (col = k*Cin + cin)
    s1/b1  : (Cmid, 1)          folded bn1 scale / bias (conv bias included)
    w2_ref : (Cout, K*Cmid)     conv2 weights, im2col-flattened
    s2/b2  : (Cout, 1)          folded bn2 scale / bias
    o_ref  : (Nb, Cout, L)      output chunk
    """
    nb = x_ref.shape[0]
    pad = K // 2
    cdt = w1_ref.dtype          # matmul compute dtype (f32 or bf16)

    w1 = w1_ref[...]
    w2 = w2_ref[...]
    s1 = s1_ref[...]
    b1 = b1_ref[...]
    s2 = s2_ref[...]
    b2 = b2_ref[...]

    for b in range(nb):                                     # static unroll over batch rows
        xb = x_ref[b]                                       # (Cin, L) f32

        # --- conv1 + bn1 + LeakyReLU (single MXU push via im2col) ----------
        cols1 = _im2col_lanes(xb, K, pad).astype(cdt)       # (K*Cin, L)
        y1 = jnp.dot(w1, cols1, preferred_element_type=jnp.float32)   # (Cmid, L) f32
        y1 = y1 * s1 + b1
        y1 = jnp.where(y1 > 0, y1, NEG_SLOPE * y1)

        # --- conv2 + bn2 + identity shortcut + LeakyReLU --------------------
        cols2 = _im2col_lanes(y1, K, pad).astype(cdt)       # (K*Cmid, L)
        y2 = jnp.dot(w2, cols2, preferred_element_type=jnp.float32)   # (Cout, L) f32
        y2 = y2 * s2 + b2 + xb                              # Cin == Cout identity residual
        o_ref[b] = jnp.where(y2 > 0, y2, NEG_SLOPE * y2).astype(o_ref.dtype)


def _pick_batch_block(N, max_nb=8):
    """Pack batch rows per grid step to amortize per-step overhead, while keeping
    >= 2 grid steps when possible so v7x's 2 TensorCores both get work."""
    divs = [d for d in range(1, min(N, max_nb) + 1) if N % d == 0]
    multi = [d for d in divs if N // d >= 2]
    return max(multi) if multi else max(divs)


@functools.partial(jax.jit, static_argnames=("pad1", "use_bf16_matmul", "batch_block"))
def basic_block_pallas(x_ncl, params, pad1=1, use_bf16_matmul=False, batch_block=None):
    """x_ncl: (N, Cin, L) float32, PyTorch NCL layout. Returns (N, Cout, L)."""
    N, Cin, L = x_ncl.shape
    Cmid, w1_cin, K = params["w1"].shape
    Cout = params["w2"].shape[0]

    # Supported configuration: stride=1, dilation=1, downsample=None (identity shortcut).
    assert w1_cin == Cin
    assert K % 2 == 1 and pad1 == K // 2, "identity residual requires 'same' convs"
    assert Cin == Cout, "downsample / stride != 1 shortcut path is not supported"

    nb = _pick_batch_block(N) if batch_block is None else batch_block
    assert N % nb == 0

    x = x_ncl.astype(jnp.float32)

    # im2col-flattened weights: PyTorch (Cout, Cin, K) -> (Cout, K, Cin) -> (Cout, K*Cin)
    wdt = jnp.bfloat16 if use_bf16_matmul else jnp.float32
    w1f = jnp.transpose(params["w1"], (0, 2, 1)).reshape(Cmid, K * Cin).astype(wdt)
    w2f = jnp.transpose(params["w2"], (0, 2, 1)).reshape(Cout, K * Cmid).astype(wdt)

    # fold conv bias + eval-mode BN into per-channel scale / bias (f32 epilogue)
    g1, be1, m1, v1 = params["bn1"]
    s1 = g1 / jnp.sqrt(v1 + BN_EPS)
    bb1 = be1 + s1 * (params["b1"] - m1)
    g2, be2, m2, v2 = params["bn2"]
    s2 = g2 / jnp.sqrt(v2 + BN_EPS)
    bb2 = be2 + s2 * (params["b2"] - m2)

    out = pl.pallas_call(
        functools.partial(basic_block_kernel, K=K),
        out_shape=jax.ShapeDtypeStruct((N, Cout, L), jnp.float32),
        grid=(N // nb,),
        in_specs=[
            pl.BlockSpec((nb, Cin, L), lambda n: (n, 0, 0)),       # x (also shortcut)
            pl.BlockSpec((Cmid, K * Cin), lambda n: (0, 0)),       # w1 (im2col flat)
            pl.BlockSpec((Cmid, 1), lambda n: (0, 0)),             # bn1 scale
            pl.BlockSpec((Cmid, 1), lambda n: (0, 0)),             # bn1 bias
            pl.BlockSpec((Cout, K * Cmid), lambda n: (0, 0)),      # w2 (im2col flat)
            pl.BlockSpec((Cout, 1), lambda n: (0, 0)),             # bn2 scale
            pl.BlockSpec((Cout, 1), lambda n: (0, 0)),             # bn2 bias
        ],
        out_specs=pl.BlockSpec((nb, Cout, L), lambda n: (n, 0, 0)),
        compiler_params=pltpu.CompilerParams(dimension_semantics=("parallel",)),
    )(x, w1f,
      s1.reshape(Cmid, 1).astype(jnp.float32), bb1.reshape(Cmid, 1).astype(jnp.float32),
      w2f,
      s2.reshape(Cout, 1).astype(jnp.float32), bb2.reshape(Cout, 1).astype(jnp.float32))
    return out


def basic_block_reference(x, params, pad1=1):
    """Pure-JAX reference mirroring the PyTorch forward (eval-mode BN)."""
    def conv1d(x, w, b, pad):
        y = jax.lax.conv_general_dilated(
            x, w, window_strides=(1,), padding=[(pad, pad)],
            dimension_numbers=("NCH", "OIH", "NCH"))
        return y + b[None, :, None]

    def bn(x, p):
        g, b, m, v = p
        return g[None, :, None] * (x - m[None, :, None]) / \
            jnp.sqrt(v[None, :, None] + BN_EPS) + b[None, :, None]

    def lrelu(x):
        return jnp.where(x > 0, x, NEG_SLOPE * x)

    K = params["w1"].shape[2]
    shortcut = x
    h = conv1d(x, params["w1"], params["b1"], pad1)
    h = lrelu(bn(h, params["bn1"]))
    h = conv1d(h, params["w2"], params["b2"], K // 2)
    h = bn(h, params["bn2"])
    return lrelu(h + shortcut)


def make_params(key, inplanes, planes, ker_size):
    ks = jax.random.split(key, 4)
    w1 = 0.2 * jax.random.normal(ks[0], (planes, inplanes, ker_size), jnp.float32)
    b1 = 0.1 * jax.random.normal(ks[1], (planes,), jnp.float32)
    w2 = 0.2 * jax.random.normal(ks[2], (planes, planes, ker_size), jnp.float32)
    b2 = 0.1 * jax.random.normal(ks[3], (planes,), jnp.float32)
    # deterministic, non-trivial BN params / running stats
    bn1 = (jnp.linspace(0.5, 1.5, planes, dtype=jnp.float32),          # gamma
           jnp.linspace(-0.2, 0.2, planes, dtype=jnp.float32),         # beta
           jnp.linspace(-0.1, 0.1, planes, dtype=jnp.float32),         # running_mean
           jnp.linspace(0.8, 1.2, planes, dtype=jnp.float32))          # running_var
    bn2 = (jnp.linspace(1.2, 0.6, planes, dtype=jnp.float32),
           jnp.linspace(0.1, -0.1, planes, dtype=jnp.float32),
           jnp.linspace(0.05, -0.05, planes, dtype=jnp.float32),
           jnp.linspace(1.1, 0.9, planes, dtype=jnp.float32))
    return {"w1": w1, "b1": b1, "w2": w2, "b2": b2, "bn1": bn1, "bn2": bn2}


if __name__ == "__main__":
    # BasicBlock(inplanes=8, planes=8, ker_size=3, stride=1, downsample=None,
    #            dilation=1, first_dilation=1)  -> residual path is identity.
    # L=128 keeps the lane dimension dense (full 128-lane vregs, unmasked stores).
    N, C, L, K = 2, 8, 128, 3
    key = jax.random.PRNGKey(0)
    kx, kp = jax.random.split(key)
    x = jax.random.normal(kx, (N, C, L), jnp.float32)
    params = make_params(kp, C, C, K)

    ref = basic_block_reference(x, params, pad1=K // 2)

    # f32 path (exact check against the f32 reference)
    out = jax.block_until_ready(basic_block_pallas(x, params, pad1=K // 2))
    assert out.shape == ref.shape == (N, C, L)
    assert jnp.allclose(out, ref, atol=1e-4, rtol=1e-4), \
        f"max abs err {jnp.max(jnp.abs(out - ref))}"

    # bf16 MXU path (v6e/v7x feedback): bf16 matmul inputs, f32 accumulation/epilogue.
    out_bf16 = jax.block_until_ready(
        basic_block_pallas(x, params, pad1=K // 2, use_bf16_matmul=True))
    assert jnp.allclose(out_bf16, ref, atol=5e-2, rtol=5e-2), \
        f"bf16 max abs err {jnp.max(jnp.abs(out_bf16 - ref))}"

    print("KERNEL_OK")
</pallas_src>

<mosaic_0001>
module attributes {stable_mosaic.version = 11 : i64} {
  func.func @basic_block_kernel(%arg0: i32, %arg1: memref<1x8x128xf32, #tpu.memory_space<vmem>>, %arg2: memref<8x24xf32, #tpu.memory_space<vmem>>, %arg3: memref<8x1xf32, #tpu.memory_space<vmem>>, %arg4: memref<8x1xf32, #tpu.memory_space<vmem>>, %arg5: memref<8x24xf32, #tpu.memory_space<vmem>>, %arg6: memref<8x1xf32, #tpu.memory_space<vmem>>, %arg7: memref<8x1xf32, #tpu.memory_space<vmem>>, %arg8: memref<1x8x128xf32, #tpu.memory_space<vmem>>) attributes {dimension_semantics = [#tpu.dimension_semantics<parallel>], iteration_bounds = array<i64: 2>, scalar_prefetch = 0 : i64, scratch_operands = 0 : i64, tpu.core_type = #tpu.core_type<tc>, window_params = [{transform_indices = @transform_0, window_bounds = array<i64: 1, 8, 128>}, {pipeline_mode = #tpu.pipeline_mode<synchronous>, transform_indices = @transform_1, window_bounds = array<i64: 8, 24>}, {pipeline_mode = #tpu.pipeline_mode<synchronous>, transform_indices = @transform_2, window_bounds = array<i64: 8, 1>}, {pipeline_mode = #tpu.pipeline_mode<synchronous>, transform_indices = @transform_3, window_bounds = array<i64: 8, 1>}, {pipeline_mode = #tpu.pipeline_mode<synchronous>, transform_indices = @transform_4, window_bounds = array<i64: 8, 24>}, {pipeline_mode = #tpu.pipeline_mode<synchronous>, transform_indices = @transform_5, window_bounds = array<i64: 8, 1>}, {pipeline_mode = #tpu.pipeline_mode<synchronous>, transform_indices = @transform_6, window_bounds = array<i64: 8, 1>}, {transform_indices = @transform_7, window_bounds = array<i64: 1, 8, 128>}]} {
    %c0 = arith.constant 0 : index
    %c0_0 = arith.constant 0 : index
    %0 = vector.load %arg2[%c0, %c0_0] : memref<8x24xf32, #tpu.memory_space<vmem>>, vector<8x24xf32>
    %c0_1 = arith.constant 0 : index
    %c0_2 = arith.constant 0 : index
    %1 = vector.load %arg5[%c0_1, %c0_2] : memref<8x24xf32, #tpu.memory_space<vmem>>, vector<8x24xf32>
    %c0_3 = arith.constant 0 : index
    %c0_4 = arith.constant 0 : index
    %2 = vector.load %arg3[%c0_3, %c0_4] : memref<8x1xf32, #tpu.memory_space<vmem>>, vector<8x1xf32>
    %c0_5 = arith.constant 0 : index
    %c0_6 = arith.constant 0 : index
    %3 = vector.load %arg4[%c0_5, %c0_6] : memref<8x1xf32, #tpu.memory_space<vmem>>, vector<8x1xf32>
    %c0_7 = arith.constant 0 : index
    %c0_8 = arith.constant 0 : index
    %4 = vector.load %arg6[%c0_7, %c0_8] : memref<8x1xf32, #tpu.memory_space<vmem>>, vector<8x1xf32>
    %c0_9 = arith.constant 0 : index
    %c0_10 = arith.constant 0 : index
    %5 = vector.load %arg7[%c0_9, %c0_10] : memref<8x1xf32, #tpu.memory_space<vmem>>, vector<8x1xf32>
    %c0_11 = arith.constant 0 : index
    %c0_12 = arith.constant 0 : index
    %c0_13 = arith.constant 0 : index
    %6 = vector.load %arg1[%c0_11, %c0_12, %c0_13] : memref<1x8x128xf32, #tpu.memory_space<vmem>>, vector<1x8x128xf32>
    %7 = vector.shape_cast %6 : vector<1x8x128xf32> to vector<8x128xf32>
    %8 = tpu.iota {dimensions = array<i32: 1>} : vector<8x128xi32>
    %c1_i32 = arith.constant 1 : i32
    %9 = tpu.dynamic_rotate %7 by %c1_i32 dim 1 : vector<8x128xf32>, i32 -> vector<8x128xf32>
    %c1_i32_14 = arith.constant 1 : i32
    %10 = vector.broadcast %c1_i32_14 : i32 to vector<8x128xi32>
    %11 = arith.cmpi sge, %8, %10 : vector<8x128xi32>
    %c129_i32 = arith.constant 129 : i32
    %12 = vector.broadcast %c129_i32 : i32 to vector<8x128xi32>
    %13 = arith.cmpi slt, %8, %12 : vector<8x128xi32>
    %14 = arith.andi %11, %13 : vector<8x128xi1>
    %cst = arith.constant 0.000000e+00 : f32
    %15 = vector.broadcast %cst : f32 to vector<8x128xf32>
    %16 = arith.select %14, %9, %15 : vector<8x128xi1>, vector<8x128xf32>
    %c127_i32 = arith.constant 127 : i32
    %17 = tpu.dynamic_rotate %7 by %c127_i32 dim 1 : vector<8x128xf32>, i32 -> vector<8x128xf32>
    %c-1_i32 = arith.constant -1 : i32
    %18 = vector.broadcast %c-1_i32 : i32 to vector<8x128xi32>
    %19 = arith.cmpi sge, %8, %18 : vector<8x128xi32>
    %c127_i32_15 = arith.constant 127 : i32
    %20 = vector.broadcast %c127_i32_15 : i32 to vector<8x128xi32>
    %21 = arith.cmpi slt, %8, %20 : vector<8x128xi32>
    %22 = arith.andi %19, %21 : vector<8x128xi1>
    %cst_16 = arith.constant 0.000000e+00 : f32
    %23 = vector.broadcast %cst_16 : f32 to vector<8x128xf32>
    %24 = arith.select %22, %17, %23 : vector<8x128xi1>, vector<8x128xf32>
    %25 = tpu.concatenate %16, %7, %24 in 0 : vector<8x128xf32>, vector<8x128xf32>, vector<8x128xf32> -> vector<24x128xf32>
    %cst_17 = arith.constant dense<0.000000e+00> : vector<8x128xf32>
    %26 = tpu.matmul %0, %25, %cst_17 {dimension_numbers = #tpu.dot_dimension_numbers<[1], [0], [0], [1], [0, 0, 1, 1], [], []>} : vector<8x24xf32>, vector<24x128xf32>, vector<8x128xf32> -> vector<8x128xf32>
    %27 = vector.broadcast %2 : vector<8x1xf32> to vector<8x128xf32>
    %28 = arith.mulf %26, %27 : vector<8x128xf32>
    %29 = vector.broadcast %3 : vector<8x1xf32> to vector<8x128xf32>
    %30 = arith.addf %28, %29 : vector<8x128xf32>
    %cst_18 = arith.constant 0.000000e+00 : f32
    %31 = vector.broadcast %cst_18 : f32 to vector<8x128xf32>
    %32 = arith.cmpf ogt, %30, %31 : vector<8x128xf32>
    %cst_19 = arith.constant 0.00999999977 : f32
    %33 = vector.broadcast %cst_19 : f32 to vector<8x128xf32>
    %34 = arith.mulf %33, %30 : vector<8x128xf32>
    %35 = arith.select %32, %30, %34 : vector<8x128xi1>, vector<8x128xf32>
    %36 = tpu.iota {dimensions = array<i32: 1>} : vector<8x128xi32>
    %c1_i32_20 = arith.constant 1 : i32
    %37 = tpu.dynamic_rotate %35 by %c1_i32_20 dim 1 : vector<8x128xf32>, i32 -> vector<8x128xf32>
    %c1_i32_21 = arith.constant 1 : i32
    %38 = vector.broadcast %c1_i32_21 : i32 to vector<8x128xi32>
    %39 = arith.cmpi sge, %36, %38 : vector<8x128xi32>
    %c129_i32_22 = arith.constant 129 : i32
    %40 = vector.broadcast %c129_i32_22 : i32 to vector<8x128xi32>
    %41 = arith.cmpi slt, %36, %40 : vector<8x128xi32>
    %42 = arith.andi %39, %41 : vector<8x128xi1>
    %cst_23 = arith.constant 0.000000e+00 : f32
    %43 = vector.broadcast %cst_23 : f32 to vector<8x128xf32>
    %44 = arith.select %42, %37, %43 : vector<8x128xi1>, vector<8x128xf32>
    %c127_i32_24 = arith.constant 127 : i32
    %45 = tpu.dynamic_rotate %35 by %c127_i32_24 dim 1 : vector<8x128xf32>, i32 -> vector<8x128xf32>
    %c-1_i32_25 = arith.constant -1 : i32
    %46 = vector.broadcast %c-1_i32_25 : i32 to vector<8x128xi32>
    %47 = arith.cmpi sge, %36, %46 : vector<8x128xi32>
    %c127_i32_26 = arith.constant 127 : i32
    %48 = vector.broadcast %c127_i32_26 : i32 to vector<8x128xi32>
    %49 = arith.cmpi slt, %36, %48 : vector<8x128xi32>
    %50 = arith.andi %47, %49 : vector<8x128xi1>
    %cst_27 = arith.constant 0.000000e+00 : f32
    %51 = vector.broadcast %cst_27 : f32 to vector<8x128xf32>
    %52 = arith.select %50, %45, %51 : vector<8x128xi1>, vector<8x128xf32>
    %53 = tpu.concatenate %44, %35, %52 in 0 : vector<8x128xf32>, vector<8x128xf32>, vector<8x128xf32> -> vector<24x128xf32>
    %cst_28 = arith.constant dense<0.000000e+00> : vector<8x128xf32>
    %54 = tpu.matmul %1, %53, %cst_28 {dimension_numbers = #tpu.dot_dimension_numbers<[1], [0], [0], [1], [0, 0, 1, 1], [], []>} : vector<8x24xf32>, vector<24x128xf32>, vector<8x128xf32> -> vector<8x128xf32>
    %55 = vector.broadcast %4 : vector<8x1xf32> to vector<8x128xf32>
    %56 = arith.mulf %54, %55 : vector<8x128xf32>
    %57 = vector.broadcast %5 : vector<8x1xf32> to vector<8x128xf32>
    %58 = arith.addf %56, %57 : vector<8x128xf32>
    %59 = arith.addf %58, %7 : vector<8x128xf32>
    %cst_29 = arith.constant 0.000000e+00 : f32
    %60 = vector.broadcast %cst_29 : f32 to vector<8x128xf32>
    %61 = arith.cmpf ogt, %59, %60 : vector<8x128xf32>
    %cst_30 = arith.constant 0.00999999977 : f32
    %62 = vector.broadcast %cst_30 : f32 to vector<8x128xf32>
    %63 = arith.mulf %62, %59 : vector<8x128xf32>
    %64 = arith.select %61, %59, %63 : vector<8x128xi1>, vector<8x128xf32>
    %c0_31 = arith.constant 0 : index
    %c0_32 = arith.constant 0 : index
    %c0_33 = arith.constant 0 : index
    %65 = vector.load %arg8[%c0_31, %c0_32, %c0_33] : memref<1x8x128xf32, #tpu.memory_space<vmem>>, vector<1x8x128xf32>
    %66 = vector.shape_cast %65 : vector<1x8x128xf32> to vector<8x128xf32>
    %67 = vector.shape_cast %64 : vector<8x128xf32> to vector<1x8x128xf32>
    tpu.vector_store %arg8[%c0_31, %c0_32, %c0_33], %67 {strides = array<i32>} : memref<1x8x128xf32, #tpu.memory_space<vmem>>, vector<1x8x128xf32>,
    return
  }
  func.func @transform_0(%arg0: i32) -> (i32, i32, i32) {
    %c0_i32 = arith.constant 0 : i32
    %c0_i32_0 = arith.constant 0 : i32
    %c0_i32_1 = arith.constant 0 : i32
    return %arg0, %c0_i32, %c0_i32_0 : i32, i32, i32
  }
  func.func @transform_1(%arg0: i32) -> (i32, i32) {
    %c0_i32 = arith.constant 0 : i32
    %c0_i32_0 = arith.constant 0 : i32
    %c0_i32_1 = arith.constant 0 : i32
    return %c0_i32, %c0_i32_0 : i32, i32
  }
  func.func @transform_2(%arg0: i32) -> (i32, i32) {
    %c0_i32 = arith.constant 0 : i32
    %c0_i32_0 = arith.constant 0 : i32
    %c0_i32_1 = arith.constant 0 : i32
    return %c0_i32, %c0_i32_0 : i32, i32
  }
  func.func @transform_3(%arg0: i32) -> (i32, i32) {
    %c0_i32 = arith.constant 0 : i32
    %c0_i32_0 = arith.constant 0 : i32
    %c0_i32_1 = arith.constant 0 : i32
    return %c0_i32, %c0_i32_0 : i32, i32
  }
  func.func @transform_4(%arg0: i32) -> (i32, i32) {
    %c0_i32 = arith.constant 0 : i32
    %c0_i32_0 = arith.constant 0 : i32
    %c0_i32_1 = arith.constant 0 : i32
    return %c0_i32, %c0_i32_0 : i32, i32
  }
  func.func @transform_5(%arg0: i32) -> (i32, i32) {
    %c0_i32 = arith.constant 0 : i32
    %c0_i32_0 = arith.constant 0 : i32
    %c0_i32_1 = arith.constant 0 : i32
    return %c0_i32, %c0_i32_0 : i32, i32
  }
  func.func @transform_6(%arg0: i32) -> (i32, i32) {
    %c0_i32 = arith.constant 0 : i32
    %c0_i32_0 = arith.constant 0 : i32
    %c0_i32_1 = arith.constant 0 : i32
    return %c0_i32, %c0_i32_0 : i32, i32
  }
  func.func @transform_7(%arg0: i32) -> (i32, i32, i32) {
    %c0_i32 = arith.constant 0 : i32
    %c0_i32_0 = arith.constant 0 : i32
    %c0_i32_1 = arith.constant 0 : i32
    return %arg0, %c0_i32, %c0_i32_0 : i32, i32, i32
  }
}

</mosaic_0001>

<bundles_post_ra>
// kernel: basic_block_pallas.1
= control target key start
LH: loop header
LB: loop body
LE: loop exit
PB: predicated region body
PF: predicated region fallthrough
CT: control target
= control target key end

     0   :  { %12 = vsyncpa [#allocation3], 0  ;;  %s895_s0 = inlined_call_operand.vmem [shape: f32[2,8,128], index: 0, kind: input, shape index: {}]   ;;  %s896_s1 = inlined_call_operand.vmem [shape: f32[8,24], index: 1, kind: input, shape index: {}]   ;;  %s897_s2 = inlined_call_operand.vmem [shape: f32[8,1], index: 2, kind: input, shape index: {}]   ;;  %s898_s3 = inlined_call_operand.vmem [shape: f32[8,1], index: 3, kind: input, shape index: {}]   ;;  %s899_s4 = inlined_call_operand.vmem [shape: f32[8,24], index: 4, kind: input, shape index: {}]   ;;  %s900_s5 = inlined_call_operand.vmem [shape: f32[8,1], index: 5, kind: input, shape index: {}]   ;;  %s901_s6 = inlined_call_operand.vmem [shape: f32[8,1], index: 6, kind: input, shape index: {}]   ;;  %s902_s7 = inlined_call_operand.hbm [shape: f32[2,8,128], index: 7, kind: output, shape index: {}]  }
   0x1   :  { %14 = vsyncpa [#allocation3 + $0x1], 0  ;;  %s763_s24 = smov 0   ;;  %s765_s25 = smov 0  }
   0x2   :  { %s767_s26 = smov 0   ;;  %s769_s27 = smov 0  }
   0x3 LB: > { %s784_s28 = sadd.s32 4294967295, %s713_s27   ;;  %s553_s29 = sadd.s32 4294967294, %s713_s27   ;;  %s713_s27 = sphi %s769_s27, %s910_s27   ;;  %s709_s26 = sphi %s767_s26, %s909_s26   ;;  %s705_s25 = sphi %s765_s25, %s908_s25   ;;  %s701_s24 = sphi %s763_s24, %s907_s24  }
   0x4   : > { %s788_s30 = sadd.s32 1, %s713_s27   ;;  %s179_s8 = sadd.s32 1, %s709_s26 }
   0x5   : > { %s176_s9 = ssub.s32 %s713_s27, %s788_s30  ;;  %p189_p0 = scmp.ne.s32.totalorder %s709_s26, %s705_s25 }
   0x6   : > { %p177_p1 = scmp.eq.s32.totalorder %s176_s9, 0  ;;  %p190_p2 = scmp.eq.s32.totalorder %s784_s28, 1 }
   0x7   : > { %p195_p3 = scmp.ne.s32.totalorder %s705_s25, %s701_s24  ;;  %p196_p4 = scmp.eq.s32.totalorder %s553_s29, 1 }
   0x8   : > { %s799_s10 = scalar_select %p177_p1, %s709_s26, %s179_s8  }
   0x9   : > { %p801_p5 = por %p190_p2, %p189_p0  ;;  %p805_p6 = por %p196_p4, %p195_p3 }
   0xa   : > { %p556_p7 = scmp.ge.s32.totalorder %s713_s27, 1  ;;  %p239_p8 = scmp.lt.s32.totalorder %s713_s27, 3 }
   0xc   : > { %p240_p9 = pnand %p556_p7, %p239_p8 }
   0xd   : > { %p270_p10 = scmp.lt.s32.totalorder (!%p240_p9), %s784_s28, 1  ;;  %v715_v0 = vmov (!%p240_p9), 0.0|0.0   ;;  %v276_v1 = vld [vmem:[%s897_s2] sm:$0xff] (!%p240_p9)  ;;  %vm716_vm0 = vmmov (!%p240_p9), 0   ;;  %v717_v2 = vmov (!%p240_p9), 0.0   ;;  %v718_v3 = vmov (!%p240_p9), 0  }
   0xe   : > { %243 = sbr.rel (%p240_p9) target bundleno = 724 (0x2d4), region = 48  ;;  %595 = vmatprep.subr.bf16.mxu0 (!%p240_p9), %v715_v0  ;;  %599 = vmatprep.subr.bf16.mxu1 (!%p240_p9), %v715_v0  ;;  %v277_v4 = vld [vmem:[%s898_s3] sm:$0xff] (!%p240_p9)  ;;  %s719_s22 = smov (!%p240_p9), 1   ;;  %v281_v6 = vlaneseq (!%p240_p9)  ;;  %vm721_vm2 = vmmov (!%p240_p9), 1   ;;  %vm295_vm5 = vcmask (!%p240_p9), 195584  }
   0xf   : > { %583 = vmatprep.mubr.msk.f32.mxu0 (!%p240_p9), %vm716_vm0, %v717_v2  ;;  %649 = vset.pattern.permute.xlu1 (!%p240_p9), %v718_v3  ;;  %s720_s23 = smov (!%p240_p9), 127   ;;  %v274_v12 = vld [vmem:[%s896_s1] sm:$0xff] (!%p240_p9)  ;;  %s267_s18 = sand.u32 (!%p240_p9), 1, %s705_s25  }
  0x10   : > { %371 = vperm.xlu1 (!%p240_p9), %649, %v276_v1   ;;  %592 = vmatprep.mubr.msk.f32.mxu1 (!%p240_p9), %vm716_vm0, %v717_v2  ;;  %v282_v7 = vand.u32 (!%p240_p9), 127, %v281_v6  ;;  %v279_v21 = vld [vmem:[%s901_s6] sm:$0xff] (!%p240_p9)  ;;  %s557_s19 = sshll.u32 (!%p240_p9), %s267_s18, 3  ;;  %s566_s20 = sshll.u32 (!%p240_p9), %s784_s28, 7 }
  0x11   : > { %650 = vset.pattern.permute.xlu0 (!%p240_p9), %v718_v3  ;;  %v278_v22 = vld [vmem:[%s900_s5] sm:$0xff] (!%p240_p9)  ;;  %s853_s8 = scalar_lea.hbm (!%p240_p9), %s902_s7, %s566_s20  ;;  %s481_s9 = scalar_lea.sflag (!%p240_p9), [#allocation3], %s267_s18 }
  0x12   : > { %vm285_vm1 = vcmp.ge.s32.totalorder (!%p240_p9), %v282_v7, 1  ;;  %vm292_vm4 = vcmp.lt.s32.totalorder (!%p240_p9), %v282_v7, 127  ;;  %v275_v25 = vld [vmem:[%s899_s4] sm:$0xff] (!%p240_p9) }
  0x13   : > { %vm823_vm3 = vmpackc.low (!%p240_p9), %vm721_vm2, %vm285_vm1 }
  0x14   : > { %377 = vperm.xlu1 (!%p240_p9), %649, %v277_v4  }
  0x15   : > { %s271_s15 = scalar_select %p270_p10, %s784_s28, 1 }
  0x16   : > { %s722_s28 = smov [#allocation2]  }
  0x17   : > { %s558_s16 = sshll.u32 %s271_s15, 3  ;;  %s655_s14 = sshll.u32 %s722_s28, 4  ;;  %s656_s14 = int_to_ptr.vmem [resolvable:$false] %s655_s14 }
  0x18   : > { %s273_s21 = scalar_lea.vmem %s895_s0, %s558_s16  ;;  %s657_s15 = scalar_lea.vmem %s656_s14, 256 }
  0x19   : > { %v280_v5 = vld [vmem:[%s273_s21] sm:$0xff]  ;;  %s269_s21 = scalar_lea.vmem [#allocation2], %s557_s19 }
  0x1a   : > { %283 = vrot.lane.b32.xlu0 %v280_v5, %s719_s22 }
  0x1e   : > { %289 = vrot.lane.b32.xlu0 %v280_v5, %s720_s23 }
  0x8c   : > { %v284_v8 = vpop.permute.xlu0 %283 }
  0x8d   : > { %v596_v10 = vpack.c.bf16 %v280_v5, %v284_v8 }
  0x8f   : > { %598 = vmatpush3.bf16.msk.msra.mxu0 %vm823_vm3, %v596_v10  ;;  %v372_v13 = vpop.permute.xlu1 %371 }
  0x90   : > { %581 = vmatprep.subr.mxu0 %v717_v2  ;;  %v290_v11 = vpop.permute.xlu0 %289 }
  0x93   : > { %582 = vmatpush3.msk.msra.mxu0 %vm292_vm4, %v290_v11  ;;  %v378_v17 = vpop.permute.xlu1 %377 }
  0x94   : > { %584 = vmatmul.mubr.msk.f32.vlgmr.msra.gmra.mrb[0].mxu0 %vm295_vm5, %v274_v12 }
 0x167   : > { %v365_v14 = vpop.f32.mrb[0].mxu0 }
 0x168   : > { %v374_v15 = vmul.f32 %v372_v13, %v365_v14  ;;  %v585_v16 = vpop.f32.mrb[1].mxu0 }
 0x16a   : > { %v380_v18 = vadd.f32 %v378_v17, %v374_v15 }
 0x16c   : > { %vm381_vm6 = vcmp.gt.f32.partialorder %v380_v18, 0.0  ;;  %v382_v19 = vmul.f32 0.01, %v380_v18 }
 0x16e   : > { %v383_v20 = vsel %vm381_vm6, %v380_v18, %v382_v19 }
 0x16f   : > { %387 = vrot.lane.b32.xlu1 %v383_v20, %s720_s23  ;;  %384 = vrot.lane.b32.xlu0 %v383_v20, %s719_s22  ;;  %s494_s22 = sshll.u32 %s269_s21, 4  ;;  %s855_s22 = int_to_ptr.vmem [resolvable:$true] %s494_s22 }
 0x170   : > { %s651_s13 = scalar_lea.vmem %s855_s22, 128  ;;  %p658_p0 = scmp.lt.s32.totalorder %s855_s22, %s656_s14 }
 0x171   : > { %p652_p11 = scmp.ne.s32.totalorder %s855_s22, %s651_s13  ;;  %p659_p1 = scmp.lt.s32.totalorder %s657_s15, %s651_s13 }
 0x173   : > { %471 = vperm.xlu1 %649, %v279_v21   ;;  %465 = vperm.xlu0 %650, %v278_v22   ;;  %p653_p12 = pnand %p652_p11, %p801_p5  ;;  %p660_p2 = por %p659_p1, %p658_p0 }
 0x175   : > { %p654_p13 = pneg %p653_p12 }
 0x177   : > { %p661_p3 = pnand %p660_p2, %p654_p13 }
 0x1e1   : > { %v385_v23 = vpop.permute.xlu0 %384  ;;  %v388_v26 = vpop.permute.xlu1 %387 }
 0x1e2   : > { %v600_v24 = vpack.c.bf16 %v383_v20, %v385_v23 }
 0x1e4   : > { %602 = vmatpush3.bf16.msk.msra.mxu1 %vm823_vm3, %v600_v24 }
 0x1e5   : > { %590 = vmatprep.subr.mxu1 %v717_v2 }
 0x1e8   : > { %591 = vmatpush3.msk.msra.mxu1 %vm292_vm4, %v388_v26 }
 0x1e9   : > { %593 = vmatmul.mubr.msk.f32.vlgmr.msra.gmra.mrb[0].mxu1 %vm295_vm5, %v275_v25 }
 0x1f2   : > { %v466_v27 = vpop.permute.xlu0 %465  ;;  %v472_v31 = vpop.permute.xlu1 %471 }
 0x2bc   : > { %v459_v28 = vpop.f32.mrb[0].mxu1 }
 0x2bd   : > { %v468_v29 = vmul.f32 %v466_v27, %v459_v28  ;;  %v594_v30 = vpop.f32.mrb[1].mxu1 }
 0x2bf   : > { %v474_v32 = vadd.f32 %v472_v31, %v468_v29 }
 0x2c1   : > { %v475_v33 = vadd.f32 %v474_v32, %v280_v5 }
 0x2c3   : > { %vm476_vm7 = vcmp.gt.f32.partialorder %v475_v33, 0.0  ;;  %v477_v34 = vmul.f32 0.01, %v475_v33 }
 0x2c5   : > { %v478_v35 = vsel %vm476_vm7, %v475_v33, %v477_v34 }
 0x2c6   : > { %479 = vst [vmem:[%s269_s21] sm:$0xff] %v478_v35 }
 0x2c7   : > { %664 = shalt.err (!%p661_p3)
}
 0x2c8   : > { %s665_s16 = scalar_lea.hbm %s853_s8, 128  ;;  %s669_s19 = scalar_lea.hbm %s902_s7, 256 }
 0x2c9   : > { %p666_p4 = scmp.ne.s32.totalorder %s853_s8, %s665_s16  ;;  %p670_p9 = scmp.lt.u32.totalorder %s853_s8, %s902_s7 }
 0x2ca   : > { %p671_p10 = scmp.lt.u32.totalorder %s669_s19, %s665_s16  ;;  %p673_p12 = scmp.lt.u32.totalorder %s665_s16, %s853_s8 }
 0x2cb   : > { %p667_p7 = pnand %p666_p4, %p801_p5 }
 0x2cc   : > { %p672_p11 = por %p671_p10, %p670_p9 }
 0x2cd   : > { %p668_p8 = pneg %p667_p7 }
 0x2ce   : > { %p674_p13 = por %p673_p12, %p672_p11 }
 0x2d0   : > { %p675_p0 = pnand %p674_p13, %p668_p8 }
 0x2d2   : > { %678 = shalt.err (!%p675_p0)
}
 0x2d3   : > { %603 = dma.vmem_to_hbm [thread:$0]  (%p801_p5), %s855_s22, 128, %s853_s8, %s481_s9  }
 0x2d4 PF: > { %p609_p1 = scmp.ge.s32.totalorder %s713_s27, 2  ;;  %s506_s23 = sand.u32 1, %s701_s24  }
 0x2d5   : > { %s507_s29 = scalar_lea.sflag [#allocation3], %s506_s23 }
 0x2d6   : > { %p606_p2 = pnand %p609_p1, %p805_p6 }
 0x2d8   : > { %696 = dma.done.wait (!%p606_p2), %s507_s29, 128  }
 0x2d9   : > { %698 = vsyncadd (!%p606_p2), %s507_s29, 4294967168  ;;  %p17_p3 = scmp.ge.s32.totalorder %s788_s30, 4   ;;  %s907_s24 = smov %s705_s25 }
 0x2da   : > { %s908_s25 = smov %s709_s26  ;;  %s909_s26 = smov %s799_s10 }
 0x2db   : > { %s910_s27 = smov %s788_s30  ;;  %19 = sbr.rel (!%p17_p3) target bundleno = 3 (0x3), region = 83 }
 0x2e2   :  { %512 = vsyncpa [#allocation3], 1 }
 0x2e3   :  { %514 = vsyncpa [#allocation3 + $0x1], 1 }

</bundles_post_ra>
